<compile_context>
chip_gen: v7x
topology: tpu7x:2x2x1
jax: 0.10.0
libtpu: 0.0.40
codegen_flags: <defaults>
</compile_context>

<pallas_src>
import jax
import jax.numpy as jnp
from jax import lax
from jax.experimental import pallas as pl
from jax.experimental.pallas import tpu as pltpu
import numpy as np

# --- synthetic MPMSimulator configuration (deterministic, in-script) ---------
N_GRID = 16
RES = (N_GRID, N_GRID, N_GRID)
DX = 1.0 / N_GRID
INV_DX = float(N_GRID)
P_MASS = (DX * 0.5) ** 3 * 1.0          # typical MPM p_vol * p_rho
N_PARTICLES = 64
DIM = 3
DENSITY_WEIGHT = 1.0                    # unused in forward (loss = density_loss)
SDF_WEIGHT = 1.0                        # unused in forward

assert (N_GRID & (N_GRID - 1)) == 0, "grid size must be a power of two"
G_SHIFT = N_GRID.bit_length() - 1       # log2(N_GRID)

# NOTE(correctness): like the torch/taichi scatter, this dense formulation is
# exact only for particles strictly inside the domain (all 27 stencil nodes in
# [0, G) and x >= 0.5*dx so int() truncation == floor).  Inputs below are
# generated in [3*dx, 1 - 3*dx], matching the original module's assumption.
# TODO(synk): the torch module's dtype branch is buggy (both branches test
# ti.f64); we fix the kernel dtype to float32.


def state_loss_kernel(pos_ref, out_ref):
    """pos_ref: (3, 2P) f32 in VMEM, lanes [0,P) = x, [P,2P) = x_target.
    out_ref: (1, 1) f32 in SMEM — the scalar loss."""
    G = N_GRID
    P = N_PARTICLES
    P2 = 2 * P

    xs = pos_ref[...] * INV_DX                        # (3, 2P)
    base = (xs - 0.5).astype(jnp.int32)               # trunc == floor (x > 0.5*dx)
    fx = xs - base.astype(jnp.float32)                # (3, 2P)

    # Quadratic B-spline weights, evaluated once per (dim, particle).
    w0 = 0.5 * (1.5 - fx) ** 2                        # (3, 2P)
    w1 = 0.75 - (fx - 1.0) ** 2
    w2 = 0.5 * (fx - 0.5) ** 2

    def node_weight(node_idx, d):
        # weight of grid node `node_idx` for every particle, along dimension d:
        # w_{node_idx - base_d}(fx_d) for offsets {0,1,2}, else 0.
        off = node_idx - base[d:d + 1, :]             # broadcast (1,2P) -> big
        return jnp.where(off == 0, w0[d:d + 1, :],
               jnp.where(off == 1, w1[d:d + 1, :],
               jnp.where(off == 2, w2[d:d + 1, :], 0.0)))

    # M[a*G + b, p] = w_x[a - base_x(p)] * w_y[b - base_y(p)]      (256, 128)
    ab = lax.broadcasted_iota(jnp.int32, (G * G, P2), 0)
    a_idx = lax.shift_right_logical(ab, G_SHIFT)      # ab // G  (power of 2)
    b_idx = lax.bitwise_and(ab, G - 1)                # ab %  G
    m = node_weight(a_idx, 0) * node_weight(b_idx, 1)

    # Signed z-weights: +w for the x half, -w for the x_target half, so the
    # single contraction below yields density(x) - density(x_target) directly.
    c_idx = lax.broadcasted_iota(jnp.int32, (G, P2), 0)          # (16, 128)
    wz = node_weight(c_idx, 2)                                   # (16, 128)
    lane = lax.broadcasted_iota(jnp.int32, (G, P2), 1)
    wz = jnp.where(lane < P, wz, -wz)

    # diff[c, a*G + b] = sum_p wz[c, p] * m[a*G + b, p]  ->  (16, 256):
    # one MXU pass, 128-deep contraction, lane-dense f32 result (4 vregs).
    diff = lax.dot_general(wz, m, (((1,), (1,)), ((), ())),
                           preferred_element_type=jnp.float32)

    # p_mass > 0 commutes through |.| and sum -> folded into the final scalar.
    out_ref[0, 0] = P_MASS * jnp.sum(jnp.abs(diff))


@jax.jit
def state_loss(x, x_target):
    # Stack the two particle sets (fused evaluation) and transpose so the
    # spatial dim leads: per-dimension reads inside the kernel are row reads.
    pos = jnp.concatenate([x, x_target], axis=0).T.astype(jnp.float32)  # (3, 2P)
    # TODO(synk): if this loss is evaluated for many (x, x_target) pairs per
    # step, batch them with grid=(B,) (and tile the particle axis for large P)
    # instead of B separate pallas_calls — at P=64/G=16 it is launch-bound.
    out = pl.pallas_call(
        state_loss_kernel,
        out_shape=jax.ShapeDtypeStruct((1, 1), jnp.float32),
        in_specs=[pl.BlockSpec(memory_space=pltpu.MemorySpace.VMEM)],
        out_specs=pl.BlockSpec(memory_space=pltpu.MemorySpace.SMEM),
    )(pos)
    return out[0, 0]


# --- pure-JAX reference (scatter-add, mirrors the torch loops) ---------------
def _ref_density(x):
    xs = x * INV_DX
    base = (xs - 0.5).astype(jnp.int32)
    fx = xs - base.astype(jnp.float32)
    w = [0.5 * (1.5 - fx) ** 2, 0.75 - (fx - 1.0) ** 2, 0.5 * (fx - 0.5) ** 2]
    dens = jnp.zeros(RES, jnp.float32)
    for i in range(3):
        for j in range(3):
            for k in range(3):
                weight = w[i][:, 0] * w[j][:, 1] * w[k][:, 2]
                idx = base + jnp.array([i, j, k], jnp.int32)
                dens = dens.at[idx[:, 0], idx[:, 1], idx[:, 2]].add(
                    weight * P_MASS)
    return dens


def _ref_loss(x, x_target):
    return jnp.sum(jnp.abs(_ref_density(x) - _ref_density(x_target)))


if __name__ == "__main__":
    key = jax.random.PRNGKey(0)
    k1, k2 = jax.random.split(key)
    # particles strictly inside the domain so all stencil nodes are in-grid
    lo, hi = 3.0 * DX, 1.0 - 3.0 * DX
    x = jax.random.uniform(k1, (N_PARTICLES, DIM), jnp.float32, lo, hi)
    x_target = jax.random.uniform(k2, (N_PARTICLES, DIM), jnp.float32, lo, hi)

    loss = state_loss(x, x_target)
    jax.block_until_ready(loss)

    loss_ref = _ref_loss(x, x_target)
    np.testing.assert_allclose(np.asarray(loss), np.asarray(loss_ref),
                               rtol=1e-3, atol=1e-6)
    print("KERNEL_OK")
</pallas_src>

<mosaic_0001>
module attributes {stable_mosaic.version = 11 : i64} {
  func.func @state_loss_kernel(%arg0: memref<3x128xf32, #tpu.memory_space<vmem>>, %arg1: memref<1x1xf32, #tpu.memory_space<smem>>) attributes {dimension_semantics = [], scalar_prefetch = 0 : i64, scratch_operands = 0 : i64, tpu.core_type = #tpu.core_type<tc>} {
    %c0 = arith.constant 0 : index
    %c0_0 = arith.constant 0 : index
    %0 = vector.load %arg0[%c0, %c0_0] : memref<3x128xf32, #tpu.memory_space<vmem>>, vector<3x128xf32>
    %cst = arith.constant 1.600000e+01 : f32
    %1 = vector.broadcast %cst : f32 to vector<3x128xf32>
    %2 = arith.mulf %0, %1 : vector<3x128xf32>
    %cst_1 = arith.constant 5.000000e-01 : f32
    %3 = vector.broadcast %cst_1 : f32 to vector<3x128xf32>
    %4 = arith.subf %2, %3 : vector<3x128xf32>
    %5 = arith.fptosi %4 : vector<3x128xf32> to vector<3x128xi32>
    %6 = arith.sitofp %5 : vector<3x128xi32> to vector<3x128xf32>
    %7 = arith.subf %2, %6 : vector<3x128xf32>
    %cst_2 = arith.constant 1.500000e+00 : f32
    %8 = vector.broadcast %cst_2 : f32 to vector<3x128xf32>
    %9 = arith.subf %8, %7 : vector<3x128xf32>
    %10 = arith.mulf %9, %9 : vector<3x128xf32>
    %cst_3 = arith.constant 5.000000e-01 : f32
    %11 = vector.broadcast %cst_3 : f32 to vector<3x128xf32>
    %12 = arith.mulf %11, %10 : vector<3x128xf32>
    %cst_4 = arith.constant 1.000000e+00 : f32
    %13 = vector.broadcast %cst_4 : f32 to vector<3x128xf32>
    %14 = arith.subf %7, %13 : vector<3x128xf32>
    %15 = arith.mulf %14, %14 : vector<3x128xf32>
    %cst_5 = arith.constant 7.500000e-01 : f32
    %16 = vector.broadcast %cst_5 : f32 to vector<3x128xf32>
    %17 = arith.subf %16, %15 : vector<3x128xf32>
    %cst_6 = arith.constant 5.000000e-01 : f32
    %18 = vector.broadcast %cst_6 : f32 to vector<3x128xf32>
    %19 = arith.subf %7, %18 : vector<3x128xf32>
    %20 = arith.mulf %19, %19 : vector<3x128xf32>
    %cst_7 = arith.constant 5.000000e-01 : f32
    %21 = vector.broadcast %cst_7 : f32 to vector<3x128xf32>
    %22 = arith.mulf %21, %20 : vector<3x128xf32>
    %23 = tpu.iota {dimensions = array<i32: 0>} : vector<256x128xi32>
    %c4_i32 = arith.constant 4 : i32
    %24 = vector.broadcast %c4_i32 : i32 to vector<256x128xi32>
    %25 = arith.shrui %23, %24 : vector<256x128xi32>
    %c15_i32 = arith.constant 15 : i32
    %26 = vector.broadcast %c15_i32 : i32 to vector<256x128xi32>
    %27 = arith.andi %23, %26 : vector<256x128xi32>
    %28 = vector.extract_strided_slice %5 {offsets = [0, 0], sizes = [1, 128], strides = [1, 1]} : vector<3x128xi32> to vector<1x128xi32>
    %29 = vector.broadcast %28 : vector<1x128xi32> to vector<256x128xi32>
    %30 = arith.subi %25, %29 : vector<256x128xi32>
    %c0_i32 = arith.constant 0 : i32
    %31 = vector.broadcast %c0_i32 : i32 to vector<256x128xi32>
    %32 = arith.cmpi eq, %30, %31 : vector<256x128xi32>
    %33 = vector.extract_strided_slice %12 {offsets = [0, 0], sizes = [1, 128], strides = [1, 1]} : vector<3x128xf32> to vector<1x128xf32>
    %c1_i32 = arith.constant 1 : i32
    %34 = vector.broadcast %c1_i32 : i32 to vector<256x128xi32>
    %35 = arith.cmpi eq, %30, %34 : vector<256x128xi32>
    %36 = vector.extract_strided_slice %17 {offsets = [0, 0], sizes = [1, 128], strides = [1, 1]} : vector<3x128xf32> to vector<1x128xf32>
    %c2_i32 = arith.constant 2 : i32
    %37 = vector.broadcast %c2_i32 : i32 to vector<256x128xi32>
    %38 = arith.cmpi eq, %30, %37 : vector<256x128xi32>
    %39 = vector.extract_strided_slice %22 {offsets = [0, 0], sizes = [1, 128], strides = [1, 1]} : vector<3x128xf32> to vector<1x128xf32>
    %cst_8 = arith.constant 0.000000e+00 : f32
    %40 = vector.shape_cast %39 : vector<1x128xf32> to vector<1x128xf32>
    %41 = vector.broadcast %40 : vector<1x128xf32> to vector<256x128xf32>
    %42 = vector.broadcast %cst_8 : f32 to vector<256x128xf32>
    %43 = arith.select %38, %41, %42 : vector<256x128xi1>, vector<256x128xf32>
    %44 = vector.shape_cast %36 : vector<1x128xf32> to vector<1x128xf32>
    %45 = vector.broadcast %44 : vector<1x128xf32> to vector<256x128xf32>
    %46 = arith.select %35, %45, %43 : vector<256x128xi1>, vector<256x128xf32>
    %47 = vector.shape_cast %33 : vector<1x128xf32> to vector<1x128xf32>
    %48 = vector.broadcast %47 : vector<1x128xf32> to vector<256x128xf32>
    %49 = arith.select %32, %48, %46 : vector<256x128xi1>, vector<256x128xf32>
    %50 = vector.extract_strided_slice %5 {offsets = [1, 0], sizes = [1, 128], strides = [1, 1]} : vector<3x128xi32> to vector<1x128xi32>
    %51 = vector.broadcast %50 : vector<1x128xi32> to vector<256x128xi32>
    %52 = arith.subi %27, %51 : vector<256x128xi32>
    %c0_i32_9 = arith.constant 0 : i32
    %53 = vector.broadcast %c0_i32_9 : i32 to vector<256x128xi32>
    %54 = arith.cmpi eq, %52, %53 : vector<256x128xi32>
    %55 = vector.extract_strided_slice %12 {offsets = [1, 0], sizes = [1, 128], strides = [1, 1]} : vector<3x128xf32> to vector<1x128xf32>
    %c1_i32_10 = arith.constant 1 : i32
    %56 = vector.broadcast %c1_i32_10 : i32 to vector<256x128xi32>
    %57 = arith.cmpi eq, %52, %56 : vector<256x128xi32>
    %58 = vector.extract_strided_slice %17 {offsets = [1, 0], sizes = [1, 128], strides = [1, 1]} : vector<3x128xf32> to vector<1x128xf32>
    %c2_i32_11 = arith.constant 2 : i32
    %59 = vector.broadcast %c2_i32_11 : i32 to vector<256x128xi32>
    %60 = arith.cmpi eq, %52, %59 : vector<256x128xi32>
    %61 = vector.extract_strided_slice %22 {offsets = [1, 0], sizes = [1, 128], strides = [1, 1]} : vector<3x128xf32> to vector<1x128xf32>
    %cst_12 = arith.constant 0.000000e+00 : f32
    %62 = vector.shape_cast %61 : vector<1x128xf32> to vector<1x128xf32>
    %63 = vector.broadcast %62 : vector<1x128xf32> to vector<256x128xf32>
    %64 = vector.broadcast %cst_12 : f32 to vector<256x128xf32>
    %65 = arith.select %60, %63, %64 : vector<256x128xi1>, vector<256x128xf32>
    %66 = vector.shape_cast %58 : vector<1x128xf32> to vector<1x128xf32>
    %67 = vector.broadcast %66 : vector<1x128xf32> to vector<256x128xf32>
    %68 = arith.select %57, %67, %65 : vector<256x128xi1>, vector<256x128xf32>
    %69 = vector.shape_cast %55 : vector<1x128xf32> to vector<1x128xf32>
    %70 = vector.broadcast %69 : vector<1x128xf32> to vector<256x128xf32>
    %71 = arith.select %54, %70, %68 : vector<256x128xi1>, vector<256x128xf32>
    %72 = arith.mulf %49, %71 : vector<256x128xf32>
    %73 = tpu.iota {dimensions = array<i32: 0>} : vector<16x128xi32>
    %74 = vector.extract_strided_slice %5 {offsets = [2, 0], sizes = [1, 128], strides = [1, 1]} : vector<3x128xi32> to vector<1x128xi32>
    %75 = vector.broadcast %74 : vector<1x128xi32> to vector<16x128xi32>
    %76 = arith.subi %73, %75 : vector<16x128xi32>
    %c0_i32_13 = arith.constant 0 : i32
    %77 = vector.broadcast %c0_i32_13 : i32 to vector<16x128xi32>
    %78 = arith.cmpi eq, %76, %77 : vector<16x128xi32>
    %79 = vector.extract_strided_slice %12 {offsets = [2, 0], sizes = [1, 128], strides = [1, 1]} : vector<3x128xf32> to vector<1x128xf32>
    %c1_i32_14 = arith.constant 1 : i32
    %80 = vector.broadcast %c1_i32_14 : i32 to vector<16x128xi32>
    %81 = arith.cmpi eq, %76, %80 : vector<16x128xi32>
    %82 = vector.extract_strided_slice %17 {offsets = [2, 0], sizes = [1, 128], strides = [1, 1]} : vector<3x128xf32> to vector<1x128xf32>
    %c2_i32_15 = arith.constant 2 : i32
    %83 = vector.broadcast %c2_i32_15 : i32 to vector<16x128xi32>
    %84 = arith.cmpi eq, %76, %83 : vector<16x128xi32>
    %85 = vector.extract_strided_slice %22 {offsets = [2, 0], sizes = [1, 128], strides = [1, 1]} : vector<3x128xf32> to vector<1x128xf32>
    %cst_16 = arith.constant 0.000000e+00 : f32
    %86 = vector.shape_cast %85 : vector<1x128xf32> to vector<1x128xf32>
    %87 = vector.broadcast %86 : vector<1x128xf32> to vector<16x128xf32>
    %88 = vector.broadcast %cst_16 : f32 to vector<16x128xf32>
    %89 = arith.select %84, %87, %88 : vector<16x128xi1>, vector<16x128xf32>
    %90 = vector.shape_cast %82 : vector<1x128xf32> to vector<1x128xf32>
    %91 = vector.broadcast %90 : vector<1x128xf32> to vector<16x128xf32>
    %92 = arith.select %81, %91, %89 : vector<16x128xi1>, vector<16x128xf32>
    %93 = vector.shape_cast %79 : vector<1x128xf32> to vector<1x128xf32>
    %94 = vector.broadcast %93 : vector<1x128xf32> to vector<16x128xf32>
    %95 = arith.select %78, %94, %92 : vector<16x128xi1>, vector<16x128xf32>
    %96 = tpu.iota {dimensions = array<i32: 1>} : vector<16x128xi32>
    %c64_i32 = arith.constant 64 : i32
    %97 = vector.broadcast %c64_i32 : i32 to vector<16x128xi32>
    %98 = arith.cmpi slt, %96, %97 : vector<16x128xi32>
    %cst_17 = arith.constant 0.000000e+00 : f32
    %99 = vector.broadcast %cst_17 : f32 to vector<16x128xf32>
    %100 = arith.subf %99, %95 : vector<16x128xf32>
    %101 = arith.select %98, %95, %100 : vector<16x128xi1>, vector<16x128xf32>
    %cst_18 = arith.constant dense<0.000000e+00> : vector<16x256xf32>
    %102 = tpu.matmul %101, %72, %cst_18 {dimension_numbers = #tpu.dot_dimension_numbers<[1], [1], [0], [0], [0, 0, 1, 0], [], []>} : vector<16x128xf32>, vector<256x128xf32>, vector<16x256xf32> -> vector<16x256xf32>
    %103 = math.absf %102 : vector<16x256xf32>
    %104 = vector.shape_cast %103 : vector<16x256xf32> to vector<1x16x256xf32>
    %cst_19 = arith.constant dense<0.000000e+00> : vector<1xf32>
    %105 = vector.multi_reduction <add>, %104, %cst_19 [1, 2] : vector<1x16x256xf32> to vector<1xf32>
    %106 = vector.shape_cast %105 : vector<1xf32> to vector<1x1x1xf32>
    %107 = vector.extract %106[0, 0, 0] : f32 from vector<1x1x1xf32>
    %cst_20 = arith.constant 3.05175781E-5 : f32
    %108 = arith.mulf %cst_20, %107 : f32
    %c0_21 = arith.constant 0 : index
    %c0_22 = arith.constant 0 : index
    %109 = memref.load %arg1[%c0_21, %c0_22] : memref<1x1xf32, #tpu.memory_space<smem>>
    memref.store %108, %arg1[%c0_21, %c0_22] : memref<1x1xf32, #tpu.memory_space<smem>>
    return
  }
}

</mosaic_0001>

<bundles_post_ra>
// kernel: state_loss.1
= control target key start
LH: loop header
LB: loop body
LE: loop exit
PB: predicated region body
PF: predicated region fallthrough
CT: control target
= control target key end

     0   :  { %v24_v1 = vlaneseq  ;;  %s1350_s0 = inlined_call_operand.vmem [shape: f32[3,128], index: 0, kind: input, shape index: {}]   ;;  %s1351_s1 = inlined_call_operand.hbm [shape: f32[1,1], index: 1, kind: output, shape index: {}]  }
   0x1   :  { %v9_v0 = vld [vmem:[%s1350_s0] sm:$0x7] }
   0x2   :  { %6 = vsyncpa [#allocation3], 0  ;;  %v10_v2 = vmul.f32 16.0, %v9_v0  ;;  %v898_v3 = vshrl.u32 %v24_v1, 7  ;;  %s871_s11 = scalar_lea.hbm %s1351_s1, 16 }
   0x3   :  { %p872_p0 = scmp.ne.s32.totalorder %s1351_s1, %s871_s11  ;;  %p875_p1 = scmp.lt.u32.totalorder %s871_s11, %s1351_s1 }
   0x4   :  { %v779_v4 = vadd.f32 -0.5, %v10_v2  ;;  %v41_v5 = vadd.s32 128, %v898_v3  ;;  %v42_v6 = vadd.s32 136, %v898_v3  ;;  %v123_v7 = vsub.s32 0, %v898_v3 }
   0x5   :  { %v363_v8 = vsub.s32 1, %v898_v3  ;;  %v905_v10 = vadd.s32 8, %v898_v3  ;;  %v57_v11 = vshrl.u32 %v898_v3, 4  ;;  %v89_v12 = vand.u32 15, %v898_v3  ;;  %p877_p2 = pnand %p875_p1, %p872_p0 }
   0x6   :  { %v866_v9 = vtrunc.f32 %v779_v4  ;;  %v73_v13 = vshrl.u32 %v41_v5, 4  ;;  %v74_v14 = vshrl.u32 %v42_v6, 4  ;;  %v105_v15 = vand.u32 15, %v41_v5 }
   0x7   :  { %v106_v16 = vand.u32 15, %v42_v6  ;;  %v58_v18 = vshrl.u32 %v905_v10, 4  ;;  %v90_v19 = vand.u32 15, %v905_v10  ;;  %v914_v20 = vadd.s32 144, %v898_v3 }
   0x8   :  { %v909_v17 = vcvt.f32.s32 %v866_v9  ;;  %v917_v21 = vadd.s32 152, %v898_v3  ;;  %v920_v22 = vadd.s32 16, %v898_v3  ;;  %v923_v23 = vadd.s32 24, %v898_v3 }
   0x9   :  { %v926_v24 = vadd.s32 160, %v898_v3  ;;  %v75_v28 = vshrl.u32 %v914_v20, 4  ;;  %v107_v30 = vand.u32 15, %v914_v20 }
   0xa   :  { %v13_v25 = vcvt.s32.f32 %v909_v17  ;;  %v930_v26 = vrot.slane %v909_v17, %v123_v7  ;;  %v933_v27 = vrot.slane %v909_v17, %v363_v8  ;;  %v76_v29 = vshrl.u32 %v917_v21, 4 }
   0xb   :  { %v108_v31 = vand.u32 15, %v917_v21  ;;  %v59_v32 = vshrl.u32 %v920_v22, 4 }
   0xc   :  { %v14_v33 = vsub.f32 %v10_v2, %v13_v25  ;;  %v141_v34 = vsub.s32 %v73_v13, %v930_v26  ;;  %v142_v35 = vsub.s32 %v74_v14, %v930_v26  ;;  %v381_v36 = vsub.s32 %v105_v15, %v933_v27 }
   0xd   :  { %v382_v37 = vsub.s32 %v106_v16, %v933_v27  ;;  %v125_v38 = vsub.s32 %v57_v11, %v930_v26  ;;  %v126_v39 = vsub.s32 %v58_v18, %v930_v26  ;;  %v947_v40 = vsub.s32 %v89_v12, %v933_v27 }
   0xe   :  { %v15_v41 = vsub.f32 1.5, %v14_v33  ;;  %v780_v42 = vadd.f32 -1.0, %v14_v33  ;;  %v781_v43 = vadd.f32 -0.5, %v14_v33  ;;  %vm173_vm0 = vcmp.eq.s32.totalorder %v141_v34, 0 }
   0xf   :  { %vm174_vm1 = vcmp.eq.s32.totalorder %v142_v35, 0  ;;  %vm205_vm2 = vcmp.eq.s32.totalorder %v141_v34, 1  ;;  %vm206_vm3 = vcmp.eq.s32.totalorder %v142_v35, 1  ;;  %vm237_vm4 = vcmp.eq.s32.totalorder %v141_v34, 2 }
  0x10   :  { %v16_v44 = vmul.f32 %v15_v41, %v15_v41  ;;  %v19_v45 = vmul.f32 %v780_v42, %v780_v42  ;;  %v22_v46 = vmul.f32 %v781_v43, %v781_v43  ;;  %vm238_vm5 = vcmp.eq.s32.totalorder %v142_v35, 2 }
  0x11   :  { %vm413_vm6 = vcmp.eq.s32.totalorder %v381_v36, 0  ;;  %vm414_vm7 = vcmp.eq.s32.totalorder %v382_v37, 0  ;;  %vm445_vm8 = vcmp.eq.s32.totalorder %v381_v36, 1  ;;  %vm446_vm9 = vcmp.eq.s32.totalorder %v382_v37, 1 }
  0x12   :  { %v949_v47 = vmul.f32 0.5, %v16_v44  ;;  %v951_v48 = vsub.f32 0.75, %v19_v45  ;;  %v953_v49 = vmul.f32 0.5, %v22_v46  ;;  %vm477_vm10 = vcmp.eq.s32.totalorder %v381_v36, 2 }
  0x13   :  { %vm478_vm11 = vcmp.eq.s32.totalorder %v382_v37, 2  ;;  %vm157_vm12 = vcmp.eq.s32.totalorder %v125_v38, 0  ;;  %vm189_vm14 = vcmp.eq.s32.totalorder %v125_v38, 1  ;;  %vm190_vm15 = vcmp.eq.s32.totalorder %v126_v39, 1 }
  0x14   :  { %v956_v50 = vrot.slane %v953_v49, %v123_v7  ;;  %v959_v51 = vrot.slane %v951_v48, %v123_v7  ;;  %v962_v52 = vrot.slane %v949_v47, %v123_v7  ;;  %v965_v53 = vrot.slane %v953_v49, %v363_v8 }
  0x15   :  { %v968_v54 = vrot.slane %v951_v48, %v363_v8  ;;  %v971_v55 = vrot.slane %v949_v47, %v363_v8  ;;  %vm221_vm13 = vcmp.eq.s32.totalorder %v125_v38, 2  ;;  %v366_v12 = vsub.s32 %v90_v19, %v933_v27 }
  0x16   :  { %v273_v56 = vsel %vm237_vm4, %v956_v50, 0.0  ;;  %v274_v57 = vsel %vm238_vm5, %v956_v50, 0.0  ;;  %v513_v58 = vsel %vm477_vm10, %v965_v53, 0.0  ;;  %v514_v59 = vsel %vm478_vm11, %v965_v53, 0.0 }
  0x17   :  { %v309_v60 = vsel %vm205_vm2, %v959_v51, %v273_v56  ;;  %v310_v61 = vsel %vm206_vm3, %v959_v51, %v274_v57  ;;  %v549_v62 = vsel %vm445_vm8, %v968_v54, %v513_v58  ;;  %v550_v63 = vsel %vm446_vm9, %v968_v54, %v514_v59 }
  0x18   :  { %v345_v0 = vsel %vm173_vm0, %v962_v52, %v309_v60  ;;  %v346_v2 = vsel %vm174_vm1, %v962_v52, %v310_v61  ;;  %v585_v4 = vsel %vm413_vm6, %v971_v55, %v549_v62  ;;  %v586_v5 = vsel %vm414_vm7, %v971_v55, %v550_v63 }
  0x19   :  { %v617_v6 = vmul.f32 %v585_v4, %v345_v0  ;;  %v618_v7 = vmul.f32 %v586_v5, %v346_v2  ;;  %vm222_vm2 = vcmp.eq.s32.totalorder %v126_v39, 2  ;;  %v257_v8 = vsel %vm221_vm13, %v956_v50, 0.0 }
  0x1a   :  { %v258_v9 = vsel %vm222_vm2, %v956_v50, 0.0  ;;  %v293_v11 = vsel %vm189_vm14, %v959_v51, %v257_v8  ;;  %vm397_vm0 = vcmp.eq.s32.totalorder %v947_v40, 0  ;;  %vm429_vm1 = vcmp.eq.s32.totalorder %v947_v40, 1 }
  0x1b   :  { %v818_v13 = vpack.c.bf16 %v618_v7, %v617_v6  ;;  %v294_v14 = vsel %vm190_vm15, %v959_v51, %v258_v9  ;;  %v329_v15 = vsel %vm157_vm12, %v962_v52, %v293_v11  ;;  %vm1352_vm3 = vcmp.eq.s32.totalorder %v126_v39, 0 }
  0x1c   :  { %v330_v16 = vsel %vm1352_vm3, %v962_v52, %v294_v14  ;;  %vm398_vm4 = vcmp.eq.s32.totalorder %v366_v12, 0  ;;  %vm430_vm5 = vcmp.eq.s32.totalorder %v366_v12, 1  ;;  %vm461_vm6 = vcmp.eq.s32.totalorder %v947_v40, 2 }
  0x1d   :  { %819 = vmatprep.subr.bf16.mxu0 %v818_v13  ;;  %vm462_vm7 = vcmp.eq.s32.totalorder %v366_v12, 2  ;;  %v497_v18 = vsel %vm461_vm6, %v965_v53, 0.0  ;;  %850 = vmatprep.subr.bf16.mxu1 %v818_v13  ;;  %v143_v19 = vsub.s32 %v75_v28, %v930_v26  ;;  %v144_v25 = vsub.s32 %v76_v29, %v930_v26 }
  0x1e   :  { %v498_v33 = vsel %vm462_vm7, %v965_v53, 0.0  ;;  %v533_v34 = vsel %vm429_vm1, %v968_v54, %v497_v18  ;;  %v383_v35 = vsub.s32 %v107_v30, %v933_v27  ;;  %v384_v36 = vsub.s32 %v108_v31, %v933_v27 }
  0x1f   :  { %v534_v37 = vsel %vm430_vm5, %v968_v54, %v498_v33  ;;  %v569_v28 = vsel %vm397_vm0, %v971_v55, %v533_v34  ;;  %vm175_vm8 = vcmp.eq.s32.totalorder %v143_v19, 0  ;;  %vm176_vm9 = vcmp.eq.s32.totalorder %v144_v25, 0 }
  0x20   :  { %v570_v29 = vsel %vm398_vm4, %v971_v55, %v534_v37  ;;  %v601_v38 = vmul.f32 %v569_v28, %v329_v15  ;;  %vm207_vm10 = vcmp.eq.s32.totalorder %v143_v19, 1  ;;  %vm208_vm11 = vcmp.eq.s32.totalorder %v144_v25, 1 }
  0x21   :  { %v602_v20 = vmul.f32 %v570_v29, %v330_v16  ;;  %vm239_vm12 = vcmp.eq.s32.totalorder %v143_v19, 2  ;;  %vm240_vm13 = vcmp.eq.s32.totalorder %v144_v25, 2  ;;  %vm415_vm14 = vcmp.eq.s32.totalorder %v383_v35, 0 }
  0x22   :  { %v275_v21 = vsel %vm239_vm12, %v956_v50, 0.0  ;;  %v276_v30 = vsel %vm240_vm13, %v956_v50, 0.0  ;;  %vm416_vm15 = vcmp.eq.s32.totalorder %v384_v36, 0  ;;  %vm447_vm2 = vcmp.eq.s32.totalorder %v383_v35, 1 }
  0x23   :  { %v820_v31 = vpack.c.bf16 %v602_v20, %v601_v38  ;;  %v311_v39 = vsel %vm207_vm10, %v959_v51, %v275_v21  ;;  %v312_v40 = vsel %vm208_vm11, %v959_v51, %v276_v30  ;;  %vm448_vm0 = vcmp.eq.s32.totalorder %v384_v36, 1 }
  0x24   :  { %v347_v41 = vsel %vm175_vm8, %v962_v52, %v311_v39  ;;  %v348_v42 = vsel %vm176_vm9, %v962_v52, %v312_v40  ;;  %vm479_vm1 = vcmp.eq.s32.totalorder %v383_v35, 2  ;;  %vm480_vm3 = vcmp.eq.s32.totalorder %v384_v36, 2 }
  0x25   :  { %821 = vmatpush3.bf16.xpose.msra.mxu0 %v820_v31  ;;  %858 = vmatpush3.bf16.xpose.msra.mxu1 %v820_v31  ;;  %v515_v43 = vsel %vm479_vm1, %v965_v53, 0.0  ;;  %v516_v44 = vsel %vm480_vm3, %v965_v53, 0.0  ;;  %v60_v45 = vshrl.u32 %v923_v23, 4  ;;  %v91_v46 = vand.u32 15, %v920_v22 }
  0x26   :  { %v551_v56 = vsel %vm447_vm2, %v968_v54, %v515_v43  ;;  %v552_v57 = vsel %vm448_vm0, %v968_v54, %v516_v44  ;;  %v92_v58 = vand.u32 15, %v923_v23  ;;  %v127_v59 = vsub.s32 %v59_v32, %v930_v26 }
  0x27   :  { %v587_v60 = vsel %vm415_vm14, %v971_v55, %v551_v56  ;;  %v588_v61 = vsel %vm416_vm15, %v971_v55, %v552_v57  ;;  %v128_v62 = vsub.s32 %v60_v45, %v930_v26  ;;  %v367_v63 = vsub.s32 %v91_v46, %v933_v27 }
  0x28   :  { %v619_v0 = vmul.f32 %v587_v60, %v347_v41  ;;  %v620_v2 = vmul.f32 %v588_v61, %v348_v42  ;;  %vm159_vm4 = vcmp.eq.s32.totalorder %v127_v59, 0  ;;  %vm191_vm5 = vcmp.eq.s32.totalorder %v127_v59, 1 }
  0x29   :  { %vm160_vm6 = vcmp.eq.s32.totalorder %v128_v62, 0  ;;  %vm192_vm7 = vcmp.eq.s32.totalorder %v128_v62, 1  ;;  %vm223_vm8 = vcmp.eq.s32.totalorder %v127_v59, 2  ;;  %vm224_vm9 = vcmp.eq.s32.totalorder %v128_v62, 2 }
  0x2a   :  { %v822_v22 = vpack.c.bf16 %v620_v2, %v619_v0  ;;  %v259_v23 = vsel %vm223_vm8, %v956_v50, 0.0  ;;  %v260_v32 = vsel %vm224_vm9, %v956_v50, 0.0  ;;  %v368_v4 = vsub.s32 %v92_v58, %v933_v27 }
  0x2b   :  { %v295_v5 = vsel %vm191_vm5, %v959_v51, %v259_v23  ;;  %v296_v6 = vsel %vm192_vm7, %v959_v51, %v260_v32  ;;  %vm399_vm10 = vcmp.eq.s32.totalorder %v367_v63, 0  ;;  %vm431_vm11 = vcmp.eq.s32.totalorder %v367_v63, 1 }
  0x2c   :  { %823 = vmatprep.subr.bf16.mxu0 %v822_v22  ;;  %v331_v7 = vsel %vm159_vm4, %v962_v52, %v295_v5  ;;  %v332_v8 = vsel %vm160_vm6, %v962_v52, %v296_v6  ;;  %vm400_vm12 = vcmp.eq.s32.totalorder %v368_v4, 0  ;;  %vm432_vm13 = vcmp.eq.s32.totalorder %v368_v4, 1  ;;  %851 = vmatprep.subr.bf16.mxu1 %v822_v22 }
  0x2d   :  { %vm463_vm14 = vcmp.eq.s32.totalorder %v367_v63, 2  ;;  %vm464_vm15 = vcmp.eq.s32.totalorder %v368_v4, 2  ;;  %v46_v9 = vadd.s32 168, %v898_v3  ;;  %v77_v11 = vshrl.u32 %v926_v24, 4 }
  0x2e   :  { %v499_v12 = vsel %vm463_vm14, %v965_v53, 0.0  ;;  %v500_v13 = vsel %vm464_vm15, %v965_v53, 0.0  ;;  %v109_v14 = vand.u32 15, %v926_v24  ;;  %v29_v15 = vadd.s32 32, %v898_v3 }
  0x2f   :  { %v535_v16 = vsel %vm431_vm11, %v968_v54, %v499_v12  ;;  %v536_v18 = vsel %vm432_vm13, %v968_v54, %v500_v13  ;;  %v78_v19 = vshrl.u32 %v46_v9, 4  ;;  %v110_v25 = vand.u32 15, %v46_v9 }
  0x30   :  { %v571_v33 = vsel %vm399_vm10, %v971_v55, %v535_v16  ;;  %v572_v34 = vsel %vm400_vm12, %v971_v55, %v536_v18  ;;  %v145_v35 = vsub.s32 %v77_v11, %v930_v26  ;;  %v385_v36 = vsub.s32 %v109_v14, %v933_v27 }
  0x31   :  { %v603_v37 = vmul.f32 %v571_v33, %v331_v7  ;;  %v604_v24 = vmul.f32 %v572_v34, %v332_v8  ;;  %v146_v28 = vsub.s32 %v78_v19, %v930_v26  ;;  %v386_v29 = vsub.s32 %v110_v25, %v933_v27 }
  0x32   :  { %vm177_vm2 = vcmp.eq.s32.totalorder %v145_v35, 0  ;;  %vm209_vm0 = vcmp.eq.s32.totalorder %v145_v35, 1  ;;  %vm241_vm1 = vcmp.eq.s32.totalorder %v145_v35, 2  ;;  %vm417_vm3 = vcmp.eq.s32.totalorder %v385_v36, 0 }
  0x33   :  { %v824_v38 = vpack.c.bf16 %v604_v24, %v603_v37  ;;  %vm178_vm4 = vcmp.eq.s32.totalorder %v146_v28, 0  ;;  %vm210_vm5 = vcmp.eq.s32.totalorder %v146_v28, 1  ;;  %vm242_vm6 = vcmp.eq.s32.totalorder %v146_v28, 2 }
  0x34   :  { %v277_v20 = vsel %vm241_vm1, %v956_v50, 0.0  ;;  %v278_v21 = vsel %vm242_vm6, %v956_v50, 0.0  ;;  %vm418_vm7 = vcmp.eq.s32.totalorder %v386_v29, 0  ;;  %vm449_vm8 = vcmp.eq.s32.totalorder %v385_v36, 1 }
  0x35   :  { %825 = vmatpush3.bf16.xpose.msra.mxu0 %v824_v38  ;;  %859 = vmatpush3.bf16.xpose.msra.mxu1 %v824_v38  ;;  %v313_v30 = vsel %vm209_vm0, %v959_v51, %v277_v20  ;;  %v314_v31 = vsel %vm210_vm5, %v959_v51, %v278_v21  ;;  %vm450_vm9 = vcmp.eq.s32.totalorder %v386_v29, 1  ;;  %vm481_vm10 = vcmp.eq.s32.totalorder %v385_v36, 2 }
  0x36   :  { %v349_v39 = vsel %vm177_vm2, %v962_v52, %v313_v30  ;;  %v350_v40 = vsel %vm178_vm4, %v962_v52, %v314_v31  ;;  %vm482_vm11 = vcmp.eq.s32.totalorder %v386_v29, 2  ;;  %v517_v41 = vsel %vm481_vm10, %v965_v53, 0.0 }
  0x37   :  { %v518_v42 = vsel %vm482_vm11, %v965_v53, 0.0  ;;  %v553_v43 = vsel %vm449_vm8, %v968_v54, %v517_v41  ;;  %v30_v44 = vadd.s32 40, %v898_v3  ;;  %v61_v45 = vshrl.u32 %v29_v15, 4 }
  0x38   :  { %v554_v46 = vsel %vm450_vm9, %v968_v54, %v518_v42  ;;  %v589_v56 = vsel %vm417_vm3, %v971_v55, %v553_v43  ;;  %v93_v57 = vand.u32 15, %v29_v15  ;;  %v47_v58 = vadd.s32 176, %v898_v3 }
  0x39   :  { %v590_v59 = vsel %vm418_vm7, %v971_v55, %v554_v46  ;;  %v621_v60 = vmul.f32 %v589_v56, %v349_v39  ;;  %v62_v61 = vshrl.u32 %v30_v44, 4  ;;  %v94_v62 = vand.u32 15, %v30_v44 }
  0x3a   :  { %v622_v63 = vmul.f32 %v590_v59, %v350_v40  ;;  %v129_v0 = vsub.s32 %v61_v45, %v930_v26  ;;  %v369_v2 = vsub.s32 %v93_v57, %v933_v27  ;;  %v48_v22 = vadd.s32 184, %v898_v3 }
  0x3b   :  { %v130_v23 = vsub.s32 %v62_v61, %v930_v26  ;;  %v370_v32 = vsub.s32 %v94_v62, %v933_v27  ;;  %v79_v4 = vshrl.u32 %v47_v58, 4  ;;  %v111_v5 = vand.u32 15, %v47_v58 }
  0x3c   :  { %v826_v6 = vpack.c.bf16 %v622_v63, %v621_v60  ;;  %vm161_vm12 = vcmp.eq.s32.totalorder %v129_v0, 0  ;;  %vm193_vm13 = vcmp.eq.s32.totalorder %v129_v0, 1  ;;  %vm225_vm14 = vcmp.eq.s32.totalorder %v129_v0, 2 }
  0x3d   :  { %vm162_vm15 = vcmp.eq.s32.totalorder %v130_v23, 0  ;;  %vm194_vm2 = vcmp.eq.s32.totalorder %v130_v23, 1  ;;  %vm226_vm0 = vcmp.eq.s32.totalorder %v130_v23, 2  ;;  %v261_v7 = vsel %vm225_vm14, %v956_v50, 0.0 }
  0x3e   :  { %827 = vmatprep.subr.bf16.mxu0 %v826_v6  ;;  %v262_v8 = vsel %vm226_vm0, %v956_v50, 0.0  ;;  %v297_v9 = vsel %vm193_vm13, %v959_v51, %v261_v7  ;;  %vm401_vm1 = vcmp.eq.s32.totalorder %v369_v2, 0  ;;  %vm402_vm3 = vcmp.eq.s32.totalorder %v370_v32, 0  ;;  %852 = vmatprep.subr.bf16.mxu1 %v826_v6 }
  0x3f   :  { %v298_v11 = vsel %vm194_vm2, %v959_v51, %v262_v8  ;;  %v333_v12 = vsel %vm161_vm12, %v962_v52, %v297_v9  ;;  %vm433_vm4 = vcmp.eq.s32.totalorder %v369_v2, 1  ;;  %vm434_vm5 = vcmp.eq.s32.totalorder %v370_v32, 1 }
  0x40   :  { %v334_v13 = vsel %vm162_vm15, %v962_v52, %v298_v11  ;;  %vm465_vm6 = vcmp.eq.s32.totalorder %v369_v2, 2  ;;  %vm466_vm7 = vcmp.eq.s32.totalorder %v370_v32, 2  ;;  %v80_v14 = vshrl.u32 %v48_v22, 4 }
  0x41   :  { %v501_v15 = vsel %vm465_vm6, %v965_v53, 0.0  ;;  %v502_v16 = vsel %vm466_vm7, %v965_v53, 0.0  ;;  %v112_v18 = vand.u32 15, %v48_v22  ;;  %v147_v19 = vsub.s32 %v79_v4, %v930_v26 }
  0x42   :  { %v537_v25 = vsel %vm433_vm4, %v968_v54, %v501_v15  ;;  %v538_v33 = vsel %vm434_vm5, %v968_v54, %v502_v16  ;;  %v148_v34 = vsub.s32 %v80_v14, %v930_v26  ;;  %v387_v35 = vsub.s32 %v111_v5, %v933_v27 }
  0x43   :  { %v573_v36 = vsel %vm401_vm1, %v971_v55, %v537_v25  ;;  %v574_v37 = vsel %vm402_vm3, %v971_v55, %v538_v33  ;;  %vm179_vm8 = vcmp.eq.s32.totalorder %v147_v19, 0  ;;  %vm211_vm9 = vcmp.eq.s32.totalorder %v147_v19, 1 }
  0x44   :  { %v605_v24 = vmul.f32 %v573_v36, %v333_v12  ;;  %v606_v28 = vmul.f32 %v574_v37, %v334_v13  ;;  %vm180_vm10 = vcmp.eq.s32.totalorder %v148_v34, 0  ;;  %vm212_vm11 = vcmp.eq.s32.totalorder %v148_v34, 1 }
  0x45   :  { %vm243_vm12 = vcmp.eq.s32.totalorder %v147_v19, 2  ;;  %vm244_vm13 = vcmp.eq.s32.totalorder %v148_v34, 2  ;;  %v388_v29 = vsub.s32 %v112_v18, %v933_v27  ;;  %vm419_vm14 = vcmp.eq.s32.totalorder %v387_v35, 0 }
  0x46   :  { %v828_v38 = vpack.c.bf16 %v606_v28, %v605_v24  ;;  %v279_v20 = vsel %vm243_vm12, %v956_v50, 0.0  ;;  %v280_v21 = vsel %vm244_vm13, %v956_v50, 0.0  ;;  %vm451_vm15 = vcmp.eq.s32.totalorder %v387_v35, 1 }
  0x47   :  { %v315_v30 = vsel %vm211_vm9, %v959_v51, %v279_v20  ;;  %v316_v31 = vsel %vm212_vm11, %v959_v51, %v280_v21  ;;  %vm420_vm2 = vcmp.eq.s32.totalorder %v388_v29, 0  ;;  %vm452_vm0 = vcmp.eq.s32.totalorder %v388_v29, 1 }
  0x48   :  { %829 = vmatpush3.bf16.xpose.msra.mxu0 %v828_v38  ;;  %860 = vmatpush3.bf16.xpose.msra.mxu1 %v828_v38  ;;  %v351_v39 = vsel %vm179_vm8, %v962_v52, %v315_v30  ;;  %v352_v40 = vsel %vm180_vm10, %v962_v52, %v316_v31  ;;  %vm483_vm1 = vcmp.eq.s32.totalorder %v387_v35, 2  ;;  %vm484_vm3 = vcmp.eq.s32.totalorder %v388_v29, 2 }
  0x49   :  { %v519_v41 = vsel %vm483_vm1, %v965_v53, 0.0  ;;  %v520_v42 = vsel %vm484_vm3, %v965_v53, 0.0  ;;  %v31_v43 = vadd.s32 48, %v898_v3  ;;  %v32_v44 = vadd.s32 56, %v898_v3 }
  0x4a   :  { %v555_v45 = vsel %vm451_vm15, %v968_v54, %v519_v41  ;;  %v556_v46 = vsel %vm452_vm0, %v968_v54, %v520_v42  ;;  %v49_v56 = vadd.s32 192, %v898_v3  ;;  %v50_v57 = vadd.s32 200, %v898_v3 }
  0x4b   :  { %v591_v58 = vsel %vm419_vm14, %v971_v55, %v555_v45  ;;  %v592_v59 = vsel %vm420_vm2, %v971_v55, %v556_v46  ;;  %v63_v60 = vshrl.u32 %v31_v43, 4  ;;  %v64_v61 = vshrl.u32 %v32_v44, 4 }
  0x4c   :  { %v623_v62 = vmul.f32 %v591_v58, %v351_v39  ;;  %v624_v63 = vmul.f32 %v592_v59, %v352_v40  ;;  %v95_v0 = vand.u32 15, %v31_v43  ;;  %v96_v2 = vand.u32 15, %v32_v44 }
  0x4d   :  { %v131_v22 = vsub.s32 %v63_v60, %v930_v26  ;;  %v132_v23 = vsub.s32 %v64_v61, %v930_v26  ;;  %v81_v32 = vshrl.u32 %v49_v56, 4  ;;  %v82_v4 = vshrl.u32 %v50_v57, 4 }
  0x4e   :  { %v830_v5 = vpack.c.bf16 %v624_v63, %v623_v62  ;;  %v371_v6 = vsub.s32 %v95_v0, %v933_v27  ;;  %v372_v7 = vsub.s32 %v96_v2, %v933_v27  ;;  %v113_v8 = vand.u32 15, %v49_v56 }
  0x4f   :  { %vm163_vm4 = vcmp.eq.s32.totalorder %v131_v22, 0  ;;  %vm164_vm5 = vcmp.eq.s32.totalorder %v132_v23, 0  ;;  %vm195_vm6 = vcmp.eq.s32.totalorder %v131_v22, 1  ;;  %vm196_vm7 = vcmp.eq.s32.totalorder %v132_v23, 1 }
  0x50   :  { %831 = vmatprep.subr.bf16.mxu0 %v830_v5  ;;  %vm227_vm8 = vcmp.eq.s32.totalorder %v131_v22, 2  ;;  %vm228_vm9 = vcmp.eq.s32.totalorder %v132_v23, 2  ;;  %vm403_vm10 = vcmp.eq.s32.totalorder %v371_v6, 0  ;;  %vm404_vm11 = vcmp.eq.s32.totalorder %v372_v7, 0  ;;  %853 = vmatprep.subr.bf16.mxu1 %v830_v5 }
  0x51   :  { %v263_v9 = vsel %vm227_vm8, %v956_v50, 0.0  ;;  %v264_v11 = vsel %vm228_vm9, %v956_v50, 0.0  ;;  %vm435_vm12 = vcmp.eq.s32.totalorder %v371_v6, 1  ;;  %vm436_vm13 = vcmp.eq.s32.totalorder %v372_v7, 1 }
  0x52   :  { %v299_v12 = vsel %vm195_vm6, %v959_v51, %v263_v9  ;;  %v300_v13 = vsel %vm196_vm7, %v959_v51, %v264_v11  ;;  %vm467_vm14 = vcmp.eq.s32.totalorder %v371_v6, 2  ;;  %vm468_vm15 = vcmp.eq.s32.totalorder %v372_v7, 2 }
  0x53   :  { %v335_v14 = vsel %vm163_vm4, %v962_v52, %v299_v12  ;;  %v336_v15 = vsel %vm164_vm5, %v962_v52, %v300_v13  ;;  %v503_v16 = vsel %vm467_vm14, %v965_v53, 0.0  ;;  %v504_v18 = vsel %vm468_vm15, %v965_v53, 0.0 }
  0x54   :  { %v539_v19 = vsel %vm435_vm12, %v968_v54, %v503_v16  ;;  %v540_v25 = vsel %vm436_vm13, %v968_v54, %v504_v18  ;;  %v114_v33 = vand.u32 15, %v50_v57  ;;  %v149_v34 = vsub.s32 %v81_v32, %v930_v26 }
  0x55   :  { %v575_v35 = vsel %vm403_vm10, %v971_v55, %v539_v19  ;;  %v576_v36 = vsel %vm404_vm11, %v971_v55, %v540_v25  ;;  %v150_v37 = vsub.s32 %v82_v4, %v930_v26  ;;  %v389_v24 = vsub.s32 %v113_v8, %v933_v27 }
  0x56   :  { %v607_v28 = vmul.f32 %v575_v35, %v335_v14  ;;  %v608_v29 = vmul.f32 %v576_v36, %v336_v15  ;;  %vm181_vm2 = vcmp.eq.s32.totalorder %v149_v34, 0  ;;  %vm213_vm0 = vcmp.eq.s32.totalorder %v149_v34, 1 }
  0x57   :  { %vm182_vm1 = vcmp.eq.s32.totalorder %v150_v37, 0  ;;  %vm214_vm3 = vcmp.eq.s32.totalorder %v150_v37, 1  ;;  %vm245_vm4 = vcmp.eq.s32.totalorder %v149_v34, 2  ;;  %vm246_vm5 = vcmp.eq.s32.totalorder %v150_v37, 2 }
  0x58   :  { %v832_v38 = vpack.c.bf16 %v608_v29, %v607_v28  ;;  %v281_v20 = vsel %vm245_vm4, %v956_v50, 0.0  ;;  %v282_v21 = vsel %vm246_vm5, %v956_v50, 0.0  ;;  %v390_v30 = vsub.s32 %v114_v33, %v933_v27 }
  0x59   :  { %v317_v31 = vsel %vm213_vm0, %v959_v51, %v281_v20  ;;  %v318_v39 = vsel %vm214_vm3, %v959_v51, %v282_v21  ;;  %vm421_vm6 = vcmp.eq.s32.totalorder %v389_v24, 0  ;;  %vm453_vm7 = vcmp.eq.s32.totalorder %v389_v24, 1 }
  0x5a   :  { %833 = vmatpush3.bf16.xpose.msra.mxu0 %v832_v38  ;;  %861 = vmatpush3.bf16.xpose.msra.mxu1 %v832_v38  ;;  %v353_v40 = vsel %vm181_vm2, %v962_v52, %v317_v31  ;;  %v354_v41 = vsel %vm182_vm1, %v962_v52, %v318_v39  ;;  %vm422_vm8 = vcmp.eq.s32.totalorder %v390_v30, 0  ;;  %vm454_vm9 = vcmp.eq.s32.totalorder %v390_v30, 1 }
  0x5b   :  { %vm485_vm10 = vcmp.eq.s32.totalorder %v389_v24, 2  ;;  %vm486_vm11 = vcmp.eq.s32.totalorder %v390_v30, 2  ;;  %v33_v42 = vadd.s32 64, %v898_v3  ;;  %v34_v43 = vadd.s32 72, %v898_v3 }
  0x5c   :  { %v521_v44 = vsel %vm485_vm10, %v965_v53, 0.0  ;;  %v522_v45 = vsel %vm486_vm11, %v965_v53, 0.0  ;;  %v51_v46 = vadd.s32 208, %v898_v3  ;;  %v52_v56 = vadd.s32 216, %v898_v3 }
  0x5d   :  { %v557_v57 = vsel %vm453_vm7, %v968_v54, %v521_v44  ;;  %v558_v58 = vsel %vm454_vm9, %v968_v54, %v522_v45  ;;  %v65_v59 = vshrl.u32 %v33_v42, 4  ;;  %v66_v60 = vshrl.u32 %v34_v43, 4 }
  0x5e   :  { %v593_v61 = vsel %vm421_vm6, %v971_v55, %v557_v57  ;;  %v594_v62 = vsel %vm422_vm8, %v971_v55, %v558_v58  ;;  %v97_v63 = vand.u32 15, %v33_v42  ;;  %v98_v0 = vand.u32 15, %v34_v43 }
  0x5f   :  { %v625_v2 = vmul.f32 %v593_v61, %v353_v40  ;;  %v626_v22 = vmul.f32 %v594_v62, %v354_v41  ;;  %v133_v23 = vsub.s32 %v65_v59, %v930_v26  ;;  %v134_v32 = vsub.s32 %v66_v60, %v930_v26 }
  0x60   :  { %v373_v4 = vsub.s32 %v97_v63, %v933_v27  ;;  %v374_v5 = vsub.s32 %v98_v0, %v933_v27  ;;  %v83_v6 = vshrl.u32 %v51_v46, 4  ;;  %v84_v7 = vshrl.u32 %v52_v56, 4 }
  0x61   :  { %v834_v8 = vpack.c.bf16 %v626_v22, %v625_v2  ;;  %vm165_vm12 = vcmp.eq.s32.totalorder %v133_v23, 0  ;;  %vm166_vm13 = vcmp.eq.s32.totalorder %v134_v32, 0  ;;  %vm197_vm14 = vcmp.eq.s32.totalorder %v133_v23, 1 }
  0x62   :  { %vm198_vm15 = vcmp.eq.s32.totalorder %v134_v32, 1  ;;  %vm229_vm2 = vcmp.eq.s32.totalorder %v133_v23, 2  ;;  %vm230_vm0 = vcmp.eq.s32.totalorder %v134_v32, 2  ;;  %vm405_vm1 = vcmp.eq.s32.totalorder %v373_v4, 0 }
  0x63   :  { %835 = vmatprep.subr.bf16.mxu0 %v834_v8  ;;  %v265_v9 = vsel %vm229_vm2, %v956_v50, 0.0  ;;  %v266_v11 = vsel %vm230_vm0, %v956_v50, 0.0  ;;  %vm406_vm3 = vcmp.eq.s32.totalorder %v374_v5, 0  ;;  %vm437_vm4 = vcmp.eq.s32.totalorder %v373_v4, 1  ;;  %854 = vmatprep.subr.bf16.mxu1 %v834_v8 }
  0x64   :  { %v301_v12 = vsel %vm197_vm14, %v959_v51, %v265_v9  ;;  %v302_v13 = vsel %vm198_vm15, %v959_v51, %v266_v11  ;;  %vm438_vm5 = vcmp.eq.s32.totalorder %v374_v5, 1  ;;  %vm469_vm6 = vcmp.eq.s32.totalorder %v373_v4, 2 }
  0x65   :  { %v337_v14 = vsel %vm165_vm12, %v962_v52, %v301_v12  ;;  %v338_v15 = vsel %vm166_vm13, %v962_v52, %v302_v13  ;;  %vm470_vm7 = vcmp.eq.s32.totalorder %v374_v5, 2  ;;  %v505_v16 = vsel %vm469_vm6, %v965_v53, 0.0 }
  0x66   :  { %v506_v18 = vsel %vm470_vm7, %v965_v53, 0.0  ;;  %v541_v19 = vsel %vm437_vm4, %v968_v54, %v505_v16  ;;  %v115_v25 = vand.u32 15, %v51_v46  ;;  %v116_v33 = vand.u32 15, %v52_v56 }
  0x67   :  { %v542_v34 = vsel %vm438_vm5, %v968_v54, %v506_v18  ;;  %v577_v35 = vsel %vm405_vm1, %v971_v55, %v541_v19  ;;  %v151_v36 = vsub.s32 %v83_v6, %v930_v26  ;;  %v152_v37 = vsub.s32 %v84_v7, %v930_v26 }
  0x68   :  { %v578_v24 = vsel %vm406_vm3, %v971_v55, %v542_v34  ;;  %v609_v28 = vmul.f32 %v577_v35, %v337_v14  ;;  %v391_v29 = vsub.s32 %v115_v25, %v933_v27  ;;  %v392_v38 = vsub.s32 %v116_v33, %v933_v27 }
  0x69   :  { %v610_v20 = vmul.f32 %v578_v24, %v338_v15  ;;  %vm183_vm8 = vcmp.eq.s32.totalorder %v151_v36, 0  ;;  %vm184_vm9 = vcmp.eq.s32.totalorder %v152_v37, 0  ;;  %vm215_vm10 = vcmp.eq.s32.totalorder %v151_v36, 1 }
  0x6a   :  { %vm216_vm11 = vcmp.eq.s32.totalorder %v152_v37, 1  ;;  %vm247_vm12 = vcmp.eq.s32.totalorder %v151_v36, 2  ;;  %vm248_vm13 = vcmp.eq.s32.totalorder %v152_v37, 2  ;;  %vm423_vm14 = vcmp.eq.s32.totalorder %v391_v29, 0 }
  0x6b   :  { %v836_v21 = vpack.c.bf16 %v610_v20, %v609_v28  ;;  %v283_v30 = vsel %vm247_vm12, %v956_v50, 0.0  ;;  %v284_v31 = vsel %vm248_vm13, %v956_v50, 0.0  ;;  %vm424_vm15 = vcmp.eq.s32.totalorder %v392_v38, 0 }
  0x6c   :  { %v319_v39 = vsel %vm215_vm10, %v959_v51, %v283_v30  ;;  %v320_v40 = vsel %vm216_vm11, %v959_v51, %v284_v31  ;;  %vm455_vm2 = vcmp.eq.s32.totalorder %v391_v29, 1  ;;  %vm456_vm0 = vcmp.eq.s32.totalorder %v392_v38, 1 }
  0x6d   :  { %837 = vmatpush3.bf16.xpose.msra.mxu0 %v836_v21  ;;  %862 = vmatpush3.bf16.xpose.msra.mxu1 %v836_v21  ;;  %v355_v41 = vsel %vm183_vm8, %v962_v52, %v319_v39  ;;  %v356_v42 = vsel %vm184_vm9, %v962_v52, %v320_v40  ;;  %vm487_vm1 = vcmp.eq.s32.totalorder %v391_v29, 2  ;;  %vm488_vm3 = vcmp.eq.s32.totalorder %v392_v38, 2 }
  0x6e   :  { %v523_v43 = vsel %vm487_vm1, %v965_v53, 0.0  ;;  %v524_v44 = vsel %vm488_vm3, %v965_v53, 0.0  ;;  %v35_v45 = vadd.s32 80, %v898_v3  ;;  %v36_v46 = vadd.s32 88, %v898_v3 }
  0x6f   :  { %v559_v56 = vsel %vm455_vm2, %v968_v54, %v523_v43  ;;  %v560_v57 = vsel %vm456_vm0, %v968_v54, %v524_v44  ;;  %v53_v58 = vadd.s32 224, %v898_v3  ;;  %v54_v59 = vadd.s32 232, %v898_v3 }
  0x70   :  { %v595_v60 = vsel %vm423_vm14, %v971_v55, %v559_v56  ;;  %v596_v61 = vsel %vm424_vm15, %v971_v55, %v560_v57  ;;  %v67_v62 = vshrl.u32 %v35_v45, 4  ;;  %v68_v63 = vshrl.u32 %v36_v46, 4 }
  0x71   :  { %v627_v0 = vmul.f32 %v595_v60, %v355_v41  ;;  %v628_v2 = vmul.f32 %v596_v61, %v356_v42  ;;  %v99_v22 = vand.u32 15, %v35_v45  ;;  %v100_v23 = vand.u32 15, %v36_v46 }
  0x72   :  { %v135_v32 = vsub.s32 %v67_v62, %v930_v26  ;;  %v136_v4 = vsub.s32 %v68_v63, %v930_v26  ;;  %v85_v5 = vshrl.u32 %v53_v58, 4  ;;  %v86_v6 = vshrl.u32 %v54_v59, 4 }
  0x73   :  { %v838_v7 = vpack.c.bf16 %v628_v2, %v627_v0  ;;  %v375_v8 = vsub.s32 %v99_v22, %v933_v27  ;;  %v376_v9 = vsub.s32 %v100_v23, %v933_v27  ;;  %v117_v11 = vand.u32 15, %v53_v58 }
  0x74   :  { %vm167_vm4 = vcmp.eq.s32.totalorder %v135_v32, 0  ;;  %vm168_vm5 = vcmp.eq.s32.totalorder %v136_v4, 0  ;;  %vm199_vm6 = vcmp.eq.s32.totalorder %v135_v32, 1  ;;  %vm200_vm7 = vcmp.eq.s32.totalorder %v136_v4, 1 }
  0x75   :  { %839 = vmatprep.subr.bf16.mxu0 %v838_v7  ;;  %vm231_vm8 = vcmp.eq.s32.totalorder %v135_v32, 2  ;;  %vm232_vm9 = vcmp.eq.s32.totalorder %v136_v4, 2  ;;  %vm407_vm10 = vcmp.eq.s32.totalorder %v375_v8, 0  ;;  %vm408_vm11 = vcmp.eq.s32.totalorder %v376_v9, 0  ;;  %855 = vmatprep.subr.bf16.mxu1 %v838_v7 }
  0x76   :  { %v267_v12 = vsel %vm231_vm8, %v956_v50, 0.0  ;;  %v268_v13 = vsel %vm232_vm9, %v956_v50, 0.0  ;;  %vm439_vm12 = vcmp.eq.s32.totalorder %v375_v8, 1  ;;  %vm440_vm13 = vcmp.eq.s32.totalorder %v376_v9, 1 }
  0x77   :  { %v303_v14 = vsel %vm199_vm6, %v959_v51, %v267_v12  ;;  %v304_v15 = vsel %vm200_vm7, %v959_v51, %v268_v13  ;;  %vm471_vm14 = vcmp.eq.s32.totalorder %v375_v8, 2  ;;  %vm472_vm15 = vcmp.eq.s32.totalorder %v376_v9, 2 }
  0x78   :  { %v339_v16 = vsel %vm167_vm4, %v962_v52, %v303_v14  ;;  %v340_v18 = vsel %vm168_vm5, %v962_v52, %v304_v15  ;;  %v507_v19 = vsel %vm471_vm14, %v965_v53, 0.0  ;;  %v508_v25 = vsel %vm472_vm15, %v965_v53, 0.0 }
  0x79   :  { %v543_v33 = vsel %vm439_vm12, %v968_v54, %v507_v19  ;;  %v544_v34 = vsel %vm440_vm13, %v968_v54, %v508_v25  ;;  %v118_v35 = vand.u32 15, %v54_v59  ;;  %v153_v36 = vsub.s32 %v85_v5, %v930_v26 }
  0x7a   :  { %v579_v37 = vsel %vm407_vm10, %v971_v55, %v543_v33  ;;  %v580_v24 = vsel %vm408_vm11, %v971_v55, %v544_v34  ;;  %v154_v28 = vsub.s32 %v86_v6, %v930_v26  ;;  %v393_v29 = vsub.s32 %v117_v11, %v933_v27 }
  0x7b   :  { %v611_v38 = vmul.f32 %v579_v37, %v339_v16  ;;  %v612_v20 = vmul.f32 %v580_v24, %v340_v18  ;;  %vm185_vm2 = vcmp.eq.s32.totalorder %v153_v36, 0  ;;  %vm217_vm0 = vcmp.eq.s32.totalorder %v153_v36, 1 }
  0x7c   :  { %vm186_vm1 = vcmp.eq.s32.totalorder %v154_v28, 0  ;;  %vm218_vm3 = vcmp.eq.s32.totalorder %v154_v28, 1  ;;  %vm249_vm4 = vcmp.eq.s32.totalorder %v153_v36, 2  ;;  %vm250_vm5 = vcmp.eq.s32.totalorder %v154_v28, 2 }
  0x7d   :  { %v840_v21 = vpack.c.bf16 %v612_v20, %v611_v38  ;;  %v285_v30 = vsel %vm249_vm4, %v956_v50, 0.0  ;;  %v286_v31 = vsel %vm250_vm5, %v956_v50, 0.0  ;;  %v394_v39 = vsub.s32 %v118_v35, %v933_v27 }
  0x7e   :  { %v321_v40 = vsel %vm217_vm0, %v959_v51, %v285_v30  ;;  %v322_v41 = vsel %vm218_vm3, %v959_v51, %v286_v31  ;;  %vm425_vm6 = vcmp.eq.s32.totalorder %v393_v29, 0  ;;  %vm457_vm7 = vcmp.eq.s32.totalorder %v393_v29, 1 }
  0x7f   :  { %841 = vmatpush3.bf16.xpose.msra.mxu0 %v840_v21  ;;  %863 = vmatpush3.bf16.xpose.msra.mxu1 %v840_v21  ;;  %v357_v42 = vsel %vm185_vm2, %v962_v52, %v321_v40  ;;  %v358_v43 = vsel %vm186_vm1, %v962_v52, %v322_v41  ;;  %vm426_vm8 = vcmp.eq.s32.totalorder %v394_v39, 0  ;;  %vm458_vm9 = vcmp.eq.s32.totalorder %v394_v39, 1 }
  0x80   :  { %vm489_vm10 = vcmp.eq.s32.totalorder %v393_v29, 2  ;;  %vm490_vm11 = vcmp.eq.s32.totalorder %v394_v39, 2  ;;  %v37_v44 = vadd.s32 96, %v898_v3  ;;  %v38_v45 = vadd.s32 104, %v898_v3 }
  0x81   :  { %v525_v46 = vsel %vm489_vm10, %v965_v53, 0.0  ;;  %v526_v56 = vsel %vm490_vm11, %v965_v53, 0.0  ;;  %v55_v57 = vadd.s32 240, %v898_v3  ;;  %v56_v58 = vadd.s32 248, %v898_v3 }
  0x82   :  { %v561_v59 = vsel %vm457_vm7, %v968_v54, %v525_v46  ;;  %v562_v60 = vsel %vm458_vm9, %v968_v54, %v526_v56  ;;  %v69_v61 = vshrl.u32 %v37_v44, 4  ;;  %v70_v62 = vshrl.u32 %v38_v45, 4 }
  0x83   :  { %v597_v63 = vsel %vm425_vm6, %v971_v55, %v561_v59  ;;  %v598_v0 = vsel %vm426_vm8, %v971_v55, %v562_v60  ;;  %v101_v2 = vand.u32 15, %v37_v44  ;;  %v102_v22 = vand.u32 15, %v38_v45 }
  0x84   :  { %v629_v23 = vmul.f32 %v597_v63, %v357_v42  ;;  %v630_v32 = vmul.f32 %v598_v0, %v358_v43  ;;  %v137_v4 = vsub.s32 %v69_v61, %v930_v26  ;;  %v138_v5 = vsub.s32 %v70_v62, %v930_v26 }
  0x85   :  { %v377_v6 = vsub.s32 %v101_v2, %v933_v27  ;;  %v378_v7 = vsub.s32 %v102_v22, %v933_v27  ;;  %v87_v8 = vshrl.u32 %v55_v57, 4  ;;  %v88_v9 = vshrl.u32 %v56_v58, 4 }
  0x86   :  { %v842_v11 = vpack.c.bf16 %v630_v32, %v629_v23  ;;  %vm169_vm12 = vcmp.eq.s32.totalorder %v137_v4, 0  ;;  %vm170_vm13 = vcmp.eq.s32.totalorder %v138_v5, 0  ;;  %vm201_vm14 = vcmp.eq.s32.totalorder %v137_v4, 1 }
  0x87   :  { %vm202_vm15 = vcmp.eq.s32.totalorder %v138_v5, 1  ;;  %vm233_vm2 = vcmp.eq.s32.totalorder %v137_v4, 2  ;;  %vm234_vm0 = vcmp.eq.s32.totalorder %v138_v5, 2  ;;  %vm409_vm1 = vcmp.eq.s32.totalorder %v377_v6, 0 }
  0x88   :  { %843 = vmatprep.subr.bf16.mxu0 %v842_v11  ;;  %v269_v12 = vsel %vm233_vm2, %v956_v50, 0.0  ;;  %v270_v13 = vsel %vm234_vm0, %v956_v50, 0.0  ;;  %vm410_vm3 = vcmp.eq.s32.totalorder %v378_v7, 0  ;;  %vm441_vm4 = vcmp.eq.s32.totalorder %v377_v6, 1  ;;  %856 = vmatprep.subr.bf16.mxu1 %v842_v11 }
  0x89   :  { %v305_v14 = vsel %vm201_vm14, %v959_v51, %v269_v12  ;;  %v306_v15 = vsel %vm202_vm15, %v959_v51, %v270_v13  ;;  %vm442_vm5 = vcmp.eq.s32.totalorder %v378_v7, 1  ;;  %vm473_vm6 = vcmp.eq.s32.totalorder %v377_v6, 2 }
  0x8a   :  { %v341_v16 = vsel %vm169_vm12, %v962_v52, %v305_v14  ;;  %v342_v18 = vsel %vm170_vm13, %v962_v52, %v306_v15  ;;  %vm474_vm7 = vcmp.eq.s32.totalorder %v378_v7, 2  ;;  %v509_v19 = vsel %vm473_vm6, %v965_v53, 0.0 }
  0x8b   :  { %v510_v25 = vsel %vm474_vm7, %v965_v53, 0.0  ;;  %v545_v33 = vsel %vm441_vm4, %v968_v54, %v509_v19  ;;  %v119_v34 = vand.u32 15, %v55_v57  ;;  %v120_v35 = vand.u32 15, %v56_v58 }
  0x8c   :  { %v546_v36 = vsel %vm442_vm5, %v968_v54, %v510_v25  ;;  %v581_v37 = vsel %vm409_vm1, %v971_v55, %v545_v33  ;;  %v155_v24 = vsub.s32 %v87_v8, %v930_v26  ;;  %v156_v28 = vsub.s32 %v88_v9, %v930_v26 }
  0x8d   :  { %v582_v29 = vsel %vm410_vm3, %v971_v55, %v546_v36  ;;  %v613_v38 = vmul.f32 %v581_v37, %v341_v16  ;;  %v395_v20 = vsub.s32 %v119_v34, %v933_v27  ;;  %v396_v21 = vsub.s32 %v120_v35, %v933_v27 }
  0x8e   :  { %v614_v30 = vmul.f32 %v582_v29, %v342_v18  ;;  %vm187_vm8 = vcmp.eq.s32.totalorder %v155_v24, 0  ;;  %vm188_vm9 = vcmp.eq.s32.totalorder %v156_v28, 0  ;;  %vm219_vm10 = vcmp.eq.s32.totalorder %v155_v24, 1 }
  0x8f   :  { %vm220_vm11 = vcmp.eq.s32.totalorder %v156_v28, 1  ;;  %vm251_vm12 = vcmp.eq.s32.totalorder %v155_v24, 2  ;;  %vm252_vm13 = vcmp.eq.s32.totalorder %v156_v28, 2  ;;  %vm427_vm14 = vcmp.eq.s32.totalorder %v395_v20, 0 }
  0x90   :  { %v844_v31 = vpack.c.bf16 %v614_v30, %v613_v38  ;;  %v287_v39 = vsel %vm251_vm12, %v956_v50, 0.0  ;;  %v288_v40 = vsel %vm252_vm13, %v956_v50, 0.0  ;;  %vm428_vm15 = vcmp.eq.s32.totalorder %v396_v21, 0 }
  0x91   :  { %v323_v41 = vsel %vm219_vm10, %v959_v51, %v287_v39  ;;  %v324_v42 = vsel %vm220_vm11, %v959_v51, %v288_v40  ;;  %vm459_vm2 = vcmp.eq.s32.totalorder %v395_v20, 1  ;;  %vm460_vm0 = vcmp.eq.s32.totalorder %v396_v21, 1 }
  0x92   :  { %845 = vmatpush3.bf16.xpose.msra.mxu0 %v844_v31  ;;  %864 = vmatpush3.bf16.xpose.msra.mxu1 %v844_v31  ;;  %v359_v43 = vsel %vm187_vm8, %v962_v52, %v323_v41  ;;  %v360_v44 = vsel %vm188_vm9, %v962_v52, %v324_v42  ;;  %vm491_vm1 = vcmp.eq.s32.totalorder %v395_v20, 2  ;;  %vm492_vm3 = vcmp.eq.s32.totalorder %v396_v21, 2 }
  0x93   :  { %v527_v45 = vsel %vm491_vm1, %v965_v53, 0.0  ;;  %v528_v46 = vsel %vm492_vm3, %v965_v53, 0.0  ;;  %v39_v56 = vadd.s32 112, %v898_v3  ;;  %v40_v57 = vadd.s32 120, %v898_v3 }
  0x94   :  { %v563_v58 = vsel %vm459_vm2, %v968_v54, %v527_v45  ;;  %v564_v59 = vsel %vm460_vm0, %v968_v54, %v528_v46  ;;  %v635_v60 = vsub.s32 2, %v898_v3  ;;  %v664_v7 = vand.u32 127, %v24_v1 }
  0x95   :  { %v599_v61 = vsel %vm427_vm14, %v971_v55, %v563_v58  ;;  %v600_v62 = vsel %vm428_vm15, %v971_v55, %v564_v59  ;;  %v71_v63 = vshrl.u32 %v39_v56, 4  ;;  %v72_v0 = vshrl.u32 %v40_v57, 4 }
  0x96   :  { %v631_v2 = vmul.f32 %v599_v61, %v359_v43  ;;  %v632_v22 = vmul.f32 %v600_v62, %v360_v44  ;;  %v103_v23 = vand.u32 15, %v39_v56  ;;  %v104_v32 = vand.u32 15, %v40_v57 }
  0x97   :  { %v139_v4 = vsub.s32 %v71_v63, %v930_v26  ;;  %v140_v5 = vsub.s32 %v72_v0, %v930_v26  ;;  %v636_v6 = vrot.slane %v909_v17, %v635_v60  ;;  %v648_v12 = vrot.slane %v953_v49, %v635_v60 }
  0x98   :  { %v846_v8 = vpack.c.bf16 %v632_v22, %v631_v2  ;;  %v379_v9 = vsub.s32 %v103_v23, %v933_v27  ;;  %v380_v11 = vsub.s32 %v104_v32, %v933_v27 }
  0x99   :  { %vm171_vm4 = vcmp.eq.s32.totalorder %v139_v4, 0  ;;  %vm172_vm5 = vcmp.eq.s32.totalorder %v140_v5, 0  ;;  %vm203_vm6 = vcmp.eq.s32.totalorder %v139_v4, 1  ;;  %vm204_vm7 = vcmp.eq.s32.totalorder %v140_v5, 1 }
  0x9a   :  { %847 = vmatprep.subr.bf16.mxu0 %v846_v8  ;;  %vm235_vm8 = vcmp.eq.s32.totalorder %v139_v4, 2  ;;  %vm236_vm9 = vcmp.eq.s32.totalorder %v140_v5, 2  ;;  %vm411_vm10 = vcmp.eq.s32.totalorder %v379_v9, 0  ;;  %vm412_vm11 = vcmp.eq.s32.totalorder %v380_v11, 0  ;;  %857 = vmatprep.subr.bf16.mxu1 %v846_v8 }
  0x9b   :  { %v271_v17 = vsel %vm235_vm8, %v956_v50, 0.0  ;;  %v272_v1 = vsel %vm236_vm9, %v956_v50, 0.0  ;;  %vm443_vm12 = vcmp.eq.s32.totalorder %v379_v9, 1  ;;  %vm444_vm13 = vcmp.eq.s32.totalorder %v380_v11, 1 }
  0x9c   :  { %v307_v26 = vsel %vm203_vm6, %v959_v51, %v271_v17  ;;  %v308_v27 = vsel %vm204_vm7, %v959_v51, %v272_v1  ;;  %vm475_vm14 = vcmp.eq.s32.totalorder %v379_v9, 2  ;;  %vm476_vm15 = vcmp.eq.s32.totalorder %v380_v11, 2 }
  0x9d   :  { %v343_v49 = vsel %vm171_vm4, %v962_v52, %v307_v26  ;;  %v344_v13 = vsel %vm172_vm5, %v962_v52, %v308_v27  ;;  %v511_v14 = vsel %vm475_vm14, %v965_v53, 0.0  ;;  %v512_v15 = vsel %vm476_vm15, %v965_v53, 0.0 }
  0x9e   :  { %v547_v50 = vsel %vm443_vm12, %v968_v54, %v511_v14  ;;  %v548_v16 = vsel %vm444_vm13, %v968_v54, %v512_v15  ;;  %v637_v18 = vsub.s32 %v898_v3, %v636_v6  ;;  %v654_v51 = vrot.slane %v951_v48, %v635_v60 }
  0x9f   :  { %v583_v19 = vsel %vm411_vm10, %v971_v55, %v547_v50  ;;  %v584_v25 = vsel %vm412_vm11, %v971_v55, %v548_v16  ;;  %v660_v52 = vrot.slane %v949_v47, %v635_v60  ;;  %v638_v33 = vsub.s32 %v905_v10, %v636_v6 }
  0xa0   :  { %v615_v34 = vmul.f32 %v583_v19, %v343_v49  ;;  %v616_v53 = vmul.f32 %v584_v25, %v344_v13  ;;  %vm639_vm2 = vcmp.eq.s32.totalorder %v637_v18, 0  ;;  %vm641_vm0 = vcmp.eq.s32.totalorder %v637_v18, 1 }
  0xa1   :  { %vm643_vm1 = vcmp.eq.s32.totalorder %v637_v18, 2  ;;  %vm640_vm3 = vcmp.eq.s32.totalorder %v638_v33, 0  ;;  %vm642_vm4 = vcmp.eq.s32.totalorder %v638_v33, 1  ;;  %vm644_vm5 = vcmp.eq.s32.totalorder %v638_v33, 2 }
  0xa2   :  { %v848_v3 = vpack.c.bf16 %v616_v53, %v615_v34  ;;  %v649_v48 = vsel %vm643_vm1, %v648_v12, 0.0  ;;  %v650_v54 = vsel %vm644_vm5, %v648_v12, 0.0  ;;  %vm665_vm6 = vcmp.lt.s32.totalorder %v664_v7, 64 }
  0xa3   :  { %v655_v35 = vsel %vm641_vm0, %v654_v51, %v649_v48  ;;  %v656_v36 = vsel %vm642_vm4, %v654_v51, %v650_v54 }
  0xa4   :  { %849 = vmatpush3.bf16.xpose.msra.mxu0 %v848_v3  ;;  %865 = vmatpush3.bf16.xpose.msra.mxu1 %v848_v3  ;;  %v661_v55 = vsel %vm639_vm2, %v660_v52, %v655_v35  ;;  %v662_v47 = vsel %vm640_vm3, %v660_v52, %v656_v36 }
  0xa5   :  { %v666_v37 = vsub.f32 0.0, %v661_v55  ;;  %v667_v10 = vsub.f32 0.0, %v662_v47 }
  0xa7   :  { %v668_v24 = vsel %vm665_vm6, %v661_v55, %v666_v37  ;;  %v669_v28 = vsel %vm665_vm6, %v662_v47, %v667_v10 }
  0xa8   :  { %814 = vmatprep.mubr.f32.mxu0 %v668_v24  ;;  %816 = vmatprep.mubr.f32.mxu1 %v669_v28 }
  0xab   :  { %815 = vmatmul.mubr.f32.vlgmr.msra.gmra.mrb[0].mxu0 %v668_v24  ;;  %817 = vmatmul.mubr.f32.vlgmr.msra.gmra.mrb[0].mxu1 %v669_v28 }
 0x17e   :  { %v736_v29 = vpop.f32.mrb[0].mxu0  ;;  %v742_v38 = vpop.f32.mrb[0].mxu1 }
 0x17f   :  { %v747_v20 = vand.u32 2147483647, %v736_v29  ;;  %v738_v21 = vpop.f32.mrb[1].mxu0  ;;  %v744_v30 = vpop.f32.mrb[1].mxu1  ;;  %v749_v39 = vand.u32 2147483647, %v742_v38 }
 0x180   :  { %v748_v31 = vand.u32 2147483647, %v738_v21  ;;  %v750_v41 = vand.u32 2147483647, %v744_v30 }
 0x182   :  { %v751_v40 = vadd.f32 %v748_v31, %v747_v20 }
 0x184   :  { %v752_v42 = vadd.f32 %v751_v40, %v749_v39 }
 0x186   :  { %v753_v43 = vadd.f32 %v752_v42, %v750_v41 }
 0x188   :  { %754 = vadd.xlane.f32.xlu0 %v753_v43 }
 0x215   :  { %v755_v44 = vpop.xlane.xlu0 %754 }
 0x216   :  { %v756_v45 = vrot.slane %v755_v44, 4 }
 0x218   :  { %v757_v46 = vadd.f32 %v756_v45, %v755_v44 }
 0x21a   :  { %v758_v56 = vrot.slane %v757_v46, 2 }
 0x21c   :  { %v759_v57 = vadd.f32 %v758_v56, %v757_v46 }
 0x21e   :  { %v760_v58 = vrot.slane %v759_v57, 1 }
 0x220   :  { %v761_v59 = vadd.f32 %v760_v58, %v759_v57 }
 0x222   :  { %868 = vpush %v761_v59 }
 0x253   :  { %s869_s0 = spop %868 }
 0x254   :  { %s763_s8 = smul.f32 3.0517578e-05, %s869_s0 }
 0x256   :  { %765 = sst [smem:[#allocation2]] %s763_s8 }
 0x257   :  { %880 = shalt.err (!%p877_p2)
}
 0x258   :  { %s883_s16 = smov [#allocation2]  }
 0x259   :  { %773 = dma.smem_to_hbm %s883_s16, 16, %s1351_s1, [#allocation3]  }
 0x25a   :  { %881 = dma.done.wait [#allocation3], 16  }
 0x25b   :  { %882 = vsyncadd [#allocation3], 4294967280 }
 0x25c   :  { %777 = sfence }
 0x25d   :  { %778 = vsyncpa [#allocation3], 1 }

</bundles_post_ra>
